<compile_context>
chip_gen: v7x
topology: tpu7x:2x2x1
jax: 0.10.0
libtpu: 0.0.40
codegen_flags: <defaults>
</compile_context>

<pallas_src>
import functools

import jax
import jax.numpy as jnp
from jax.experimental import pallas as pl
from jax.experimental.pallas import tpu as pltpu

LANE = 128
MAX_BLOCK_ROWS = 2048   # 2048 * 128 * 4 B = 1 MiB per f32 input per pipeline buffer
ACC_ROWS = 32           # accumulator depth: 4 vregs -> 4-way ILP on the fold adds


def _bce_kernel(x_ref, t_ref, o_ref, *, eps, rows, block_rows, acc_rows,
                partial, binary_targets):
    k = pl.program_id(0)

    @pl.when(k == 0)
    def _():
        o_ref[...] = jnp.zeros_like(o_ref)

    # Load in native dtype, cast in-kernel (no extra HBM pass in the wrapper).
    x = x_ref[...].astype(jnp.float32)
    t = t_ref[...].astype(jnp.float32)

    if binary_targets:
        # Strictly 0/1 targets: one log instead of two (EUP relief on v7x).
        arg = jnp.where(t > 0.5, x, 1.0 - x)
        loss = -jnp.log(arg + eps)
    else:
        # Exact PyTorch-module semantics (supports soft targets).
        loss = -t * jnp.log(x + eps) - (1.0 - t) * jnp.log(1.0 - x + eps)

    def fold(v):
        # Fold block rows into an (acc_rows, LANE) partial sum: pure VPU adds,
        # independent accumulator vregs, no cross-lane reduce in the kernel.
        return v.reshape(block_rows // acc_rows, acc_rows, LANE).sum(axis=0)

    if partial:
        # Last grid block extends past `rows`: mask out-of-bounds garbage.
        # Only this single step pays for the iota/compare/select.
        last = pl.num_programs(0) - 1

        @pl.when(k != last)
        def _():
            o_ref[...] += fold(loss)

        @pl.when(k == last)
        def _():
            rid = jax.lax.broadcasted_iota(jnp.int32, (block_rows, LANE), 0)
            valid = (k * block_rows + rid) < rows      # row-index math: no overflow
            o_ref[...] += fold(jnp.where(valid, loss, 0.0))
    else:
        o_ref[...] += fold(loss)


def cross_entropy(x, target, eps=1e-12, binary_targets=False):
    """Mean binary cross-entropy over all elements (same math as the PyTorch module)."""
    n = x.size
    x_flat = x.reshape(-1)       # contiguous reshape: free
    t_flat = target.reshape(-1)

    tile = 8 * LANE
    padded = ((n + tile - 1) // tile) * tile
    if padded != n:
        # Zero-padded elements contribute exactly 0.0 to the sum (see header),
        # so no in-kernel element mask is needed.
        # TODO(synk): for very large unaligned inputs, peel the <1024-element
        # tail into a wrapper-side jnp expression instead of this full-copy pad.
        x_flat = jnp.pad(x_flat, (0, padded - n))
        t_flat = jnp.pad(t_flat, (0, padded - n))
    rows = padded // LANE                              # multiple of 8

    block_rows = min(MAX_BLOCK_ROWS, rows)             # multiple of 8
    acc_rows = ACC_ROWS if block_rows % ACC_ROWS == 0 else 8
    steps = pl.cdiv(rows, block_rows)
    partial = (rows % block_rows) != 0                 # static: emit mask path only if needed

    x2 = x_flat.reshape(rows, LANE)
    t2 = t_flat.reshape(rows, LANE)

    kernel = functools.partial(
        _bce_kernel, eps=eps, rows=rows, block_rows=block_rows,
        acc_rows=acc_rows, partial=partial, binary_targets=binary_targets,
    )

    partials = pl.pallas_call(
        kernel,
        out_shape=jax.ShapeDtypeStruct((acc_rows, LANE), jnp.float32),
        grid_spec=pltpu.PrefetchScalarGridSpec(
            num_scalar_prefetch=0,
            grid=(steps,),
            in_specs=[
                pl.BlockSpec((block_rows, LANE), lambda k: (k, 0)),
                pl.BlockSpec((block_rows, LANE), lambda k: (k, 0)),
            ],
            # Output block index is constant across the reduction axis ->
            # resident accumulator (init on k==0, accumulate every step).
            out_specs=pl.BlockSpec((acc_rows, LANE), lambda k: (0, 0)),
        ),
        compiler_params=pltpu.CompilerParams(
            dimension_semantics=("arbitrary",),
        ),
    )(x2, t2)

    # Single tiny cross-lane reduce + mean, outside the bandwidth-bound kernel.
    return jnp.sum(partials) / jnp.float32(n)


if __name__ == "__main__":
    key = jax.random.PRNGKey(0)
    kx, kt = jax.random.split(key)

    # NCHW-shaped "probability" input and binary target (module has no params).
    shape = (2, 4, 16, 16)
    x = jax.random.uniform(kx, shape, dtype=jnp.float32, minval=0.0, maxval=1.0)
    t = (jax.random.uniform(kt, shape, dtype=jnp.float32) > 0.5).astype(jnp.float32)

    loss = cross_entropy(x, t)
    loss = jax.block_until_ready(loss)

    # Pure-JAX reference check (same eps-add semantics as the PyTorch module).
    eps = 1e-12
    ref = jnp.mean(-t * jnp.log(x + eps) - (1.0 - t) * jnp.log(1.0 - x + eps))
    assert jnp.allclose(loss, ref, rtol=1e-5, atol=1e-6), (loss, ref)

    print("KERNEL_OK")
</pallas_src>

<mosaic_0001>
module attributes {stable_mosaic.version = 11 : i64} {
  func.func @_bce_kernel(%arg0: i32, %arg1: memref<16x128xf32, #tpu.memory_space<vmem>>, %arg2: memref<16x128xf32, #tpu.memory_space<vmem>>, %arg3: memref<8x128xf32, #tpu.memory_space<vmem>>) attributes {dimension_semantics = [#tpu.dimension_semantics<arbitrary>], iteration_bounds = array<i64: 1>, scalar_prefetch = 0 : i64, scratch_operands = 0 : i64, tpu.core_type = #tpu.core_type<tc>, window_params = [{transform_indices = @transform_0, window_bounds = array<i64: 16, 128>}, {transform_indices = @transform_1, window_bounds = array<i64: 16, 128>}, {pipeline_mode = #tpu.pipeline_mode<synchronous>, transform_indices = @transform_2, window_bounds = array<i64: 8, 128>}]} {
    %c0_i32 = arith.constant 0 : i32
    %0 = arith.cmpi eq, %arg0, %c0_i32 : i32
    %1 = arith.extui %0 : i1 to i32
    %c0_i32_0 = arith.constant 0 : i32
    %2 = arith.cmpi ne, %1, %c0_i32_0 : i32
    scf.if %2 {
      %cst_13 = arith.constant 0.000000e+00 : f32
      %25 = vector.broadcast %cst_13 : f32 to vector<8x128xf32>
      %c0_14 = arith.constant 0 : index
      %c0_15 = arith.constant 0 : index
      %26 = vector.load %arg3[%c0_14, %c0_15] : memref<8x128xf32, #tpu.memory_space<vmem>>, vector<8x128xf32>
      tpu.vector_store %arg3[%c0_14, %c0_15], %25 {strides = array<i32>} : memref<8x128xf32, #tpu.memory_space<vmem>>, vector<8x128xf32>,
    } else {
    }
    %c0 = arith.constant 0 : index
    %c0_1 = arith.constant 0 : index
    %3 = vector.load %arg1[%c0, %c0_1] : memref<16x128xf32, #tpu.memory_space<vmem>>, vector<16x128xf32>
    %c0_2 = arith.constant 0 : index
    %c0_3 = arith.constant 0 : index
    %4 = vector.load %arg2[%c0_2, %c0_3] : memref<16x128xf32, #tpu.memory_space<vmem>>, vector<16x128xf32>
    %cst = arith.constant 0.000000e+00 : f32
    %5 = vector.broadcast %cst : f32 to vector<16x128xf32>
    %6 = arith.subf %5, %4 : vector<16x128xf32>
    %cst_4 = arith.constant 9.99999996E-13 : f32
    %7 = vector.broadcast %cst_4 : f32 to vector<16x128xf32>
    %8 = arith.addf %3, %7 : vector<16x128xf32>
    %9 = math.log %8 : vector<16x128xf32>
    %10 = arith.mulf %6, %9 : vector<16x128xf32>
    %cst_5 = arith.constant 1.000000e+00 : f32
    %11 = vector.broadcast %cst_5 : f32 to vector<16x128xf32>
    %12 = arith.subf %11, %4 : vector<16x128xf32>
    %cst_6 = arith.constant 1.000000e+00 : f32
    %13 = vector.broadcast %cst_6 : f32 to vector<16x128xf32>
    %14 = arith.subf %13, %3 : vector<16x128xf32>
    %cst_7 = arith.constant 9.99999996E-13 : f32
    %15 = vector.broadcast %cst_7 : f32 to vector<16x128xf32>
    %16 = arith.addf %14, %15 : vector<16x128xf32>
    %17 = math.log %16 : vector<16x128xf32>
    %18 = arith.mulf %12, %17 : vector<16x128xf32>
    %19 = arith.subf %10, %18 : vector<16x128xf32>
    %c0_8 = arith.constant 0 : index
    %c0_9 = arith.constant 0 : index
    %20 = vector.load %arg3[%c0_8, %c0_9] : memref<8x128xf32, #tpu.memory_space<vmem>>, vector<8x128xf32>
    %21 = vector.shape_cast %19 : vector<16x128xf32> to vector<2x8x128xf32>
    %cst_10 = arith.constant dense<0.000000e+00> : vector<8x128xf32>
    %22 = vector.multi_reduction <add>, %21, %cst_10 [0] : vector<2x8x128xf32> to vector<8x128xf32>
    %23 = arith.addf %20, %22 : vector<8x128xf32>
    %c0_11 = arith.constant 0 : index
    %c0_12 = arith.constant 0 : index
    %24 = vector.load %arg3[%c0_11, %c0_12] : memref<8x128xf32, #tpu.memory_space<vmem>>, vector<8x128xf32>
    tpu.vector_store %arg3[%c0_11, %c0_12], %23 {strides = array<i32>} : memref<8x128xf32, #tpu.memory_space<vmem>>, vector<8x128xf32>,
    return
  }
  func.func @transform_0(%arg0: i32) -> (i32, i32) {
    %c0_i32 = arith.constant 0 : i32
    %c0_i32_0 = arith.constant 0 : i32
    return %arg0, %c0_i32 : i32, i32
  }
  func.func @transform_1(%arg0: i32) -> (i32, i32) {
    %c0_i32 = arith.constant 0 : i32
    %c0_i32_0 = arith.constant 0 : i32
    return %arg0, %c0_i32 : i32, i32
  }
  func.func @transform_2(%arg0: i32) -> (i32, i32) {
    %c0_i32 = arith.constant 0 : i32
    %c0_i32_0 = arith.constant 0 : i32
    %c0_i32_1 = arith.constant 0 : i32
    return %c0_i32, %c0_i32_0 : i32, i32
  }
}

</mosaic_0001>

<bundles_post_ra>
// kernel: tpu_custom_call.1
= control target key start
LH: loop header
LB: loop body
LE: loop exit
PB: predicated region body
PF: predicated region fallthrough
CT: control target
= control target key end

     0   :  { %7 = vsyncpa [#allocation3], 0  ;;  %s235_s0 = inlined_call_operand.hbm [shape: f32[16,128], index: 0, kind: input, shape index: {}]   ;;  %s236_s1 = inlined_call_operand.hbm [shape: f32[16,128], index: 1, kind: input, shape index: {}]   ;;  %s237_s2 = inlined_call_operand.hbm [shape: f32[8,128], index: 2, kind: output, shape index: {}]  }
   0x1   :  { %8 = vsyncpa [#allocation6], 0 }
   0x2   :  { %9 = vsyncpa [#allocation4], 0  ;;  %s179_s9 = smov [#allocation2]   ;;  %s107_s13 = scalar_lea.hbm %s235_s0, 256 }
   0x3   :  { %s15_s10 = sshll.u32 %s179_s9, 4  ;;  %p108_p0 = scmp.ne.s32.totalorder %s235_s0, %s107_s13  ;;  %s16_s10 = int_to_ptr.vmem [resolvable:$true] %s15_s10 }
   0x4   :  { %p111_p1 = scmp.lt.u32.totalorder %s107_s13, %s235_s0 }
   0x6   :  { %p113_p2 = pnand %p111_p1, %p108_p0 }
   0x8   :  { %116 = shalt.err (!%p113_p2)
}
   0x9   :  { %s117_s18 = scalar_lea.vmem %s16_s10, 256  ;;  %p122_p4 = scmp.lt.s32.totalorder %s16_s10, %s16_s10 }
   0xa   :  { %p118_p3 = scmp.ne.s32.totalorder %s16_s10, %s117_s18  ;;  %p123_p5 = scmp.lt.s32.totalorder %s117_s18, %s117_s18 }
   0xc   :  { %p124_p6 = por %p123_p5, %p122_p4 }
   0xe   :  { %p125_p7 = pnand %p124_p6, %p118_p3 }
  0x10   :  { %128 = shalt.err (!%p125_p7)
}
  0x11   :  { %s180_s19 = smov 128   ;;  %s181_s20 = smov 8  }
  0x12   :  { %21 = dma.hbm_to_vmem [thread:$0]  %s235_s0, 256, %s16_s10, [#allocation3], %s180_s19, %s180_s19, %s181_s20  }
  0x13   :  { %s182_s23 = smov [#allocation5]   ;;  %s129_s27 = scalar_lea.hbm %s236_s1, 256 }
  0x14   :  { %s27_s24 = sshll.u32 %s182_s23, 4  ;;  %p130_p8 = scmp.ne.s32.totalorder %s236_s1, %s129_s27  ;;  %s28_s24 = int_to_ptr.vmem [resolvable:$true] %s27_s24 }
  0x15   :  { %p133_p9 = scmp.lt.u32.totalorder %s129_s27, %s236_s1 }
  0x17   :  { %p135_p10 = pnand %p133_p9, %p130_p8 }
  0x19   :  { %138 = shalt.err (!%p135_p10)
}
  0x1a   :  { %s139_s4 = scalar_lea.vmem %s28_s24, 256  ;;  %p144_p12 = scmp.lt.s32.totalorder %s28_s24, %s28_s24 }
  0x1b   :  { %p140_p11 = scmp.ne.s32.totalorder %s28_s24, %s139_s4  ;;  %p145_p13 = scmp.lt.s32.totalorder %s139_s4, %s139_s4 }
  0x1d   :  { %p146_p0 = por %p145_p13, %p144_p12 }
  0x1f   :  { %p147_p1 = pnand %p146_p0, %p140_p11 }
  0x21   :  { %150 = shalt.err (!%p147_p1)
}
  0x22   :  { %33 = dma.hbm_to_vmem [thread:$0]  %s236_s1, 256, %s28_s24, [#allocation6], %s180_s19, %s180_s19, %s181_s20  }
  0x23   :  { %173 = dma.done.wait [#allocation3], 256  }
  0x24   :  { %174 = vsyncadd [#allocation3], 4294967040 }
  0x25   :  { %175 = dma.done.wait [#allocation6], 256  }
  0x26   :  { %176 = vsyncadd [#allocation6], 4294967040  ;;  %v45_v0 = vld [vmem:[#allocation2] sm:$0xff]  ;;  %v46_v1 = vld [vmem:[#allocation2 + $0x8] sm:$0xff]  ;;  %s183_s1 = smov [#allocation7]  }
  0x27   :  { %v51_v2 = vadd.f32 1e-12, %v45_v0  ;;  %v52_v3 = vadd.f32 1e-12, %v46_v1  ;;  %v61_v4 = vsub.f32 1.0, %v45_v0  ;;  %v62_v5 = vsub.f32 1.0, %v46_v1 }
  0x28   :  { %v47_v8 = vld [vmem:[#allocation5] sm:$0xff]  ;;  %v48_v9 = vld [vmem:[#allocation5 + $0x8] sm:$0xff]  ;;  %s83_s6 = sshll.u32 %s183_s1, 4  ;;  %s84_s6 = int_to_ptr.vmem [resolvable:$true] %s83_s6 }
  0x29   :  { %99 = vlog2.f32 %v51_v2  ;;  %v63_v6 = vadd.f32 1e-12, %v61_v4  ;;  %v64_v7 = vadd.f32 1e-12, %v62_v5  ;;  %v49_v11 = vsub.f32 0.0, %v47_v8  ;;  %s151_s7 = scalar_lea.vmem %s84_s6, 128  ;;  %p156_p3 = scmp.lt.s32.totalorder %s84_s6, %s84_s6 }
  0x2a   :  { %101 = vlog2.f32 %v52_v3  ;;  %v50_v13 = vsub.f32 0.0, %v48_v9  ;;  %v59_v16 = vsub.f32 1.0, %v47_v8  ;;  %v60_v18 = vsub.f32 1.0, %v48_v9  ;;  %p152_p2 = scmp.ne.s32.totalorder %s84_s6, %s151_s7  ;;  %p157_p4 = scmp.lt.s32.totalorder %s151_s7, %s151_s7 }
  0x2b   :  { %103 = vlog2.f32 %v63_v6 }
  0x2c   :  { %105 = vlog2.f32 %v64_v7  ;;  %p158_p5 = por %p157_p4, %p156_p3 }
  0x2e   :  { %p159_p6 = pnand %p158_p5, %p152_p2 }
  0x33   :  { %v100_v10 = vpop.eup %99 }
  0x34   :  { %v102_v12 = vpop.eup %101  ;;  %v54_v14 = vmul.f32 0.6931472, %v100_v10 }
  0x35   :  { %v56_v15 = vmul.f32 0.6931472, %v102_v12  ;;  %v104_v17 = vpop.eup %103 }
  0x36   :  { %v106_v19 = vpop.eup %105  ;;  %v57_v20 = vmul.f32 %v54_v14, %v49_v11  ;;  %v66_v21 = vmul.f32 0.6931472, %v104_v17 }
  0x37   :  { %v58_v22 = vmul.f32 %v56_v15, %v50_v13  ;;  %v68_v23 = vmul.f32 0.6931472, %v106_v19 }
  0x38   :  { %v69_v24 = vmul.f32 %v66_v21, %v59_v16 }
  0x39   :  { %v70_v25 = vmul.f32 %v68_v23, %v60_v18 }
  0x3a   :  { %v71_v26 = vsub.f32 %v57_v20, %v69_v24 }
  0x3b   :  { %v72_v27 = vsub.f32 %v58_v22, %v70_v25 }
  0x3d   :  { %v74_v28 = vadd.f32 %v72_v27, %v71_v26 }
  0x3f   :  { %76 = vst [vmem:[#allocation7] sm:$0xff] %v74_v28 }
  0x40   :  { %162 = shalt.err (!%p159_p6)
}
  0x41   :  { %s163_s10 = scalar_lea.hbm %s237_s2, 128 }
  0x42   :  { %p164_p7 = scmp.ne.s32.totalorder %s237_s2, %s163_s10  ;;  %p167_p8 = scmp.lt.u32.totalorder %s163_s10, %s237_s2 }
  0x44   :  { %p169_p9 = pnand %p167_p8, %p164_p7 }
  0x46   :  { %172 = shalt.err (!%p169_p9)
}
  0x47   :  { %86 = dma.vmem_to_hbm [thread:$0]  %s84_s6, 128, %s237_s2, [#allocation4]  }
  0x48   :  { %177 = dma.done.wait [#allocation4], 128  }
  0x49   :  { %178 = vsyncadd [#allocation4], 4294967168 }
  0x4a   :  { %90 = vsyncpa [#allocation3], 1 }
  0x4b   :  { %91 = vsyncpa [#allocation6], 1 }
  0x4c   :  { %92 = vsyncpa [#allocation4], 1 }

</bundles_post_ra>
